<compile_context>
chip_gen: v5e
topology: v5e:2x2
jax: 0.10.0
libtpu: 0.0.40
codegen_flags: <defaults>
</compile_context>

<pallas_src>
import jax
import jax.numpy as jnp
import numpy as np
from jax.experimental import pallas as pl
from jax.experimental.pallas import tpu as pltpu


def _round_up(v, m):
    return (v + m - 1) // m * m


def _conv_stats_kernel(p_ref, w_ref, y_ref, stats_ref):
    """One im2col matmul tile + per-channel BN partials (single pass).

    p_ref:     (TM, K)      bf16  im2col patch rows (zero rows beyond real data)
    w_ref:     (K, Cout)    bf16  reshaped conv weights
    y_ref:     (TM, Cout)   f32   conv output tile (written exactly once)
    stats_ref: (1, 2, Cout) f32   row 0 = sum, row 1 = sum of squares
    """
    acc = jnp.dot(p_ref[...], w_ref[...], preferred_element_type=jnp.float32)
    # Padded (all-zero) rows contribute 0 to both partials, so the wrapper can
    # divide by the true element count and stats stay exact.
    s = jnp.sum(acc, axis=0, keepdims=True)          # (1, Cout)
    sq = jnp.sum(acc * acc, axis=0, keepdims=True)   # (1, Cout)
    stats_ref[...] = jnp.concatenate([s, sq], axis=0)[None, :, :]
    y_ref[...] = acc


def _bn_relu_kernel(y_ref, scale_ref, shift_ref, out_ref):
    """Fused BN affine + ReLU epilogue: out = max(y*scale + shift, 0)."""
    out_ref[...] = jnp.maximum(y_ref[...] * scale_ref[...] + shift_ref[...], 0.0)


def _im2col(x_nchw, KH, KW, stride, pad, dilation, compute_dtype):
    """NCHW -> (N*OH*OW, KH*KW*Cin) patch matrix.  One-time XLA glue; handles
    stride / dilation / spatial padding so the kernel is a plain matmul."""
    N, Cin, H, W = x_nchw.shape
    OH = (H + 2 * pad - dilation * (KH - 1) - 1) // stride + 1
    OW = (W + 2 * pad - dilation * (KW - 1) - 1) // stride + 1
    x = jnp.transpose(x_nchw, (0, 2, 3, 1)).astype(compute_dtype)     # NHWC
    x = jnp.pad(x, ((0, 0), (pad, pad), (pad, pad), (0, 0)))
    cols = []
    for kh in range(KH):
        for kw in range(KW):
            h0, w0 = kh * dilation, kw * dilation
            sl = jax.lax.slice(
                x,
                (0, h0, w0, 0),
                (N, h0 + (OH - 1) * stride + 1, w0 + (OW - 1) * stride + 1, Cin),
                (1, stride, stride, 1))                               # (N,OH,OW,Cin)
            cols.append(sl)
    patches = jnp.concatenate(cols, axis=-1)                          # (N,OH,OW,K)
    return patches.reshape(N * OH * OW, KH * KW * Cin), OH, OW


def conv_bn_relu(x_nchw, weight_oihw, gamma, beta,
                 stride=1, pad=1, dilation=1, eps=1e-5,
                 compute_dtype=jnp.bfloat16, tm=256):
    """Conv2d(bias=False) + BatchNorm2d (training-mode batch stats) + ReLU.

    x is NCHW (PyTorch layout); result is NCHW float32.
    """
    N, Cin, H, W = x_nchw.shape
    Cout, Cin_w, KH, KW = weight_oihw.shape
    assert Cin_w == Cin
    K = KH * KW * Cin

    patches, OH, OW = _im2col(x_nchw, KH, KW, stride, pad, dilation, compute_dtype)
    MT = N * OH * OW
    # Row-tile size: multiple of 8 sublanes.  Re-derive per chip / problem size
    # for large images (v7x: 64 MiB physical VMEM vs 128 MiB on v5e/v6e).
    TM = min(tm, _round_up(MT, 8))
    MT_pad = _round_up(MT, TM)
    if MT_pad != MT:
        patches = jnp.pad(patches, ((0, MT_pad - MT), (0, 0)))
    num_tiles = MT_pad // TM

    # Weights: (Cout, Cin, KH, KW) -> (K, Cout), matching the patch column order
    # (kh-major, kw, cin-minor).
    w_mat = (jnp.transpose(weight_oihw, (2, 3, 1, 0))
             .reshape(K, Cout).astype(compute_dtype))

    # ---- Phase 1: conv tiles + per-tile BN partials -------------------------
    y, stats = pl.pallas_call(
        _conv_stats_kernel,
        grid=(num_tiles,),
        in_specs=[
            pl.BlockSpec((TM, K), lambda i: (i, 0)),
            pl.BlockSpec((K, Cout), lambda i: (0, 0)),
        ],
        out_specs=(
            pl.BlockSpec((TM, Cout), lambda i: (i, 0)),
            pl.BlockSpec((1, 2, Cout), lambda i: (i, 0, 0)),
        ),
        out_shape=(
            # f32 intermediate, real Cout only (compact in HBM).
            jax.ShapeDtypeStruct((MT_pad, Cout), jnp.float32),
            jax.ShapeDtypeStruct((num_tiles, 2, Cout), jnp.float32),
        ),
        compiler_params=pltpu.CompilerParams(
            dimension_semantics=("parallel",)),
    )(patches, w_mat)

    # ---- O(Cout) combine of BN partials -> precombined scale/shift ----------
    # NOTE: single-pass E[x^2] - E[x]^2 in f32; for |mean| >> std and very
    # large N*OH*OW a shifted/Welford combine would be numerically safer.
    cnt = jnp.float32(MT)
    total = jnp.sum(stats[:, 0, :], axis=0)                   # (Cout,)
    total_sq = jnp.sum(stats[:, 1, :], axis=0)
    mean = total / cnt
    var = jnp.maximum(total_sq / cnt - mean * mean, 0.0)      # biased batch var
    inv = jax.lax.rsqrt(var + jnp.float32(eps))
    g32 = gamma.astype(jnp.float32)
    b32 = beta.astype(jnp.float32)
    scale = (g32 * inv).reshape(1, Cout)
    shift = (b32 - mean * g32 * inv).reshape(1, Cout)

    # ---- Phase 2: fused normalize + affine + ReLU ---------------------------
    out2 = pl.pallas_call(
        _bn_relu_kernel,
        grid=(num_tiles,),
        in_specs=[
            pl.BlockSpec((TM, Cout), lambda i: (i, 0)),
            pl.BlockSpec((1, Cout), lambda i: (0, 0)),
            pl.BlockSpec((1, Cout), lambda i: (0, 0)),
        ],
        out_specs=pl.BlockSpec((TM, Cout), lambda i: (i, 0)),
        out_shape=jax.ShapeDtypeStruct((MT_pad, Cout), jnp.float32),
        compiler_params=pltpu.CompilerParams(
            dimension_semantics=("parallel",)),
    )(y, scale, shift)

    # Back to PyTorch layout.  If the consumer accepts NHWC (or bf16) this
    # slice + transpose (one extra HBM pass over the output) can be dropped.
    out = out2[:MT].reshape(N, OH, OW, Cout)
    return jnp.transpose(out, (0, 3, 1, 2))


def _reference(x_nchw, weight_oihw, gamma, beta, stride, pad, dilation, eps,
               compute_dtype=jnp.bfloat16):
    # Match the kernel's precision choice: bf16-rounded conv inputs, f32 math.
    xc = x_nchw.astype(compute_dtype).astype(jnp.float32)
    wc = weight_oihw.astype(compute_dtype).astype(jnp.float32)
    y = jax.lax.conv_general_dilated(
        xc, wc,
        window_strides=(stride, stride),
        padding=((pad, pad), (pad, pad)),
        rhs_dilation=(dilation, dilation),
        dimension_numbers=("NCHW", "OIHW", "NCHW"),
    )
    mean = jnp.mean(y, axis=(0, 2, 3), keepdims=True)
    var = jnp.mean((y - mean) ** 2, axis=(0, 2, 3), keepdims=True)
    y = (y - mean) * jax.lax.rsqrt(var + eps)
    y = y * gamma.reshape(1, -1, 1, 1) + beta.reshape(1, -1, 1, 1)
    return jnp.maximum(y, 0.0)


if __name__ == "__main__":
    # ConvBnRelu(in_planes=4, out_planes=8, ksize=3, strides=1, pads=1, has_bias=False)
    N, Cin, H, W = 2, 4, 16, 16
    Cout, KH, KW = 8, 3, 3
    eps = 1e-5

    key = jax.random.PRNGKey(0)
    kx, kw = jax.random.split(key)
    x = jax.random.normal(kx, (N, Cin, H, W), dtype=jnp.float32)
    fan_in = Cin * KH * KW
    weight = jax.random.normal(kw, (Cout, Cin, KH, KW), dtype=jnp.float32) / jnp.sqrt(fan_in)
    gamma = jnp.ones((Cout,), jnp.float32)   # PyTorch BatchNorm2d defaults
    beta = jnp.zeros((Cout,), jnp.float32)

    # (stride, pad, dilation) configurations: primary spec + stride-2 + dilation-2.
    for (stride, pad, dilation) in [(1, 1, 1), (2, 1, 1), (1, 2, 2)]:
        out = conv_bn_relu(x, weight, gamma, beta, stride=stride, pad=pad,
                           dilation=dilation, eps=eps)
        out = jax.block_until_ready(out)
        ref = _reference(x, weight, gamma, beta, stride, pad, dilation, eps)
        assert out.shape == ref.shape, (out.shape, ref.shape)
        assert np.allclose(np.asarray(out), np.asarray(ref), atol=1e-3, rtol=1e-3), \
            f"mismatch for stride={stride}, pad={pad}, dilation={dilation}"

    print("KERNEL_OK")
</pallas_src>

<mosaic_0001>
module attributes {stable_mosaic.version = 11 : i64} {
  func.func @_conv_stats_kernel(%arg0: i32, %arg1: memref<256x36xbf16, #tpu.memory_space<vmem>>, %arg2: memref<36x8xbf16, #tpu.memory_space<vmem>>, %arg3: memref<256x8xf32, #tpu.memory_space<vmem>>, %arg4: memref<1x2x8xf32, #tpu.memory_space<vmem>>) attributes {dimension_semantics = [#tpu.dimension_semantics<parallel>], iteration_bounds = array<i64: 2>, scalar_prefetch = 0 : i64, scratch_operands = 0 : i64, tpu.core_type = #tpu.core_type<tc>, window_params = [{transform_indices = @transform_0, window_bounds = array<i64: 256, 36>}, {pipeline_mode = #tpu.pipeline_mode<synchronous>, transform_indices = @transform_1, window_bounds = array<i64: 36, 8>}, {transform_indices = @transform_2, window_bounds = array<i64: 256, 8>}, {transform_indices = @transform_3, window_bounds = array<i64: 1, 2, 8>}]} {
    %c0 = arith.constant 0 : index
    %c0_0 = arith.constant 0 : index
    %0 = vector.load %arg1[%c0, %c0_0] : memref<256x36xbf16, #tpu.memory_space<vmem>>, vector<256x36xbf16>
    %c0_1 = arith.constant 0 : index
    %c0_2 = arith.constant 0 : index
    %1 = vector.load %arg2[%c0_1, %c0_2] : memref<36x8xbf16, #tpu.memory_space<vmem>>, vector<36x8xbf16>
    %cst = arith.constant dense<0.000000e+00> : vector<256x8xf32>
    %2 = tpu.matmul %0, %1, %cst {dimension_numbers = #tpu.dot_dimension_numbers<[1], [0], [0], [1], [0, 0, 1, 1], [], []>} : vector<256x36xbf16>, vector<36x8xbf16>, vector<256x8xf32> -> vector<256x8xf32>
    %cst_3 = arith.constant dense<0.000000e+00> : vector<8xf32>
    %3 = vector.multi_reduction <add>, %2, %cst_3 [0] : vector<256x8xf32> to vector<8xf32>
    %4 = vector.shape_cast %3 : vector<8xf32> to vector<1x8xf32>
    %5 = arith.mulf %2, %2 : vector<256x8xf32>
    %cst_4 = arith.constant dense<0.000000e+00> : vector<8xf32>
    %6 = vector.multi_reduction <add>, %5, %cst_4 [0] : vector<256x8xf32> to vector<8xf32>
    %7 = vector.shape_cast %6 : vector<8xf32> to vector<1x8xf32>
    %8 = tpu.concatenate %4, %7 in 0 : vector<1x8xf32>, vector<1x8xf32> -> vector<2x8xf32>
    %9 = vector.shape_cast %8 : vector<2x8xf32> to vector<1x2x8xf32>
    %c0_5 = arith.constant 0 : index
    %c0_6 = arith.constant 0 : index
    %c0_7 = arith.constant 0 : index
    %10 = vector.load %arg4[%c0_5, %c0_6, %c0_7] : memref<1x2x8xf32, #tpu.memory_space<vmem>>, vector<1x2x8xf32>
    tpu.vector_store %arg4[%c0_5, %c0_6, %c0_7], %9 {strides = array<i32>} : memref<1x2x8xf32, #tpu.memory_space<vmem>>, vector<1x2x8xf32>,
    %c0_8 = arith.constant 0 : index
    %c0_9 = arith.constant 0 : index
    %11 = vector.load %arg3[%c0_8, %c0_9] : memref<256x8xf32, #tpu.memory_space<vmem>>, vector<256x8xf32>
    tpu.vector_store %arg3[%c0_8, %c0_9], %2 {strides = array<i32>} : memref<256x8xf32, #tpu.memory_space<vmem>>, vector<256x8xf32>,
    return
  }
  func.func @transform_0(%arg0: i32) -> (i32, i32) {
    %c0_i32 = arith.constant 0 : i32
    %c0_i32_0 = arith.constant 0 : i32
    return %arg0, %c0_i32 : i32, i32
  }
  func.func @transform_1(%arg0: i32) -> (i32, i32) {
    %c0_i32 = arith.constant 0 : i32
    %c0_i32_0 = arith.constant 0 : i32
    %c0_i32_1 = arith.constant 0 : i32
    return %c0_i32, %c0_i32_0 : i32, i32
  }
  func.func @transform_2(%arg0: i32) -> (i32, i32) {
    %c0_i32 = arith.constant 0 : i32
    %c0_i32_0 = arith.constant 0 : i32
    return %arg0, %c0_i32 : i32, i32
  }
  func.func @transform_3(%arg0: i32) -> (i32, i32, i32) {
    %c0_i32 = arith.constant 0 : i32
    %c0_i32_0 = arith.constant 0 : i32
    %c0_i32_1 = arith.constant 0 : i32
    return %arg0, %c0_i32, %c0_i32_0 : i32, i32, i32
  }
}

</mosaic_0001>

<bundles_post_ra>
// kernel: tpu_custom_call.1
= control target key start
LH: loop header
LB: loop body
LE: loop exit
PB: predicated region body
PF: predicated region fallthrough
CT: control target
= control target key end

     0   :  { %9 = vsyncpa [#allocation3], 0  ;;  %s1429_s0 = inlined_call_operand.vmem [shape: bf16[512,36], index: 0, kind: input, shape index: {}]   ;;  %s1430_s1 = inlined_call_operand.vmem [shape: bf16[36,8], index: 1, kind: input, shape index: {}]   ;;  %s1431_s2 = inlined_call_operand.vmem [shape: f32[512,8], index: 2, kind: output, shape index: {0}]   ;;  %s1432_s3 = inlined_call_operand.hbm [shape: f32[2,2,8], index: 3, kind: output, shape index: {1}]  }
   0x1   :  { %11 = vsyncpa [#allocation3 + $0x1], 0  ;;  %s1027_s12 = smov 0   ;;  %s1029_s13 = smov 0  }
   0x2   :  { %s1031_s14 = smov 0   ;;  %s1033_s15 = smov 0  }
   0x3 LB: > { %s1048_s16 = sadd.s32 4294967295, %s1005_s15   ;;  %s776_s17 = sadd.s32 4294967294, %s1005_s15   ;;  %s1005_s15 = sphi %s1033_s15, %s1438_s15   ;;  %s1001_s14 = sphi %s1031_s14, %s1437_s14   ;;  %s997_s13 = sphi %s1029_s13, %s1436_s13   ;;  %s993_s12 = sphi %s1027_s12, %s1435_s12  }
   0x4   : > { %s1052_s18 = sadd.s32 1, %s1005_s15   ;;  %s97_s19 = sadd.s32 1, %s1001_s14 }
   0x5   : > { %s94_s20 = ssub.s32 %s1005_s15, %s1052_s18  ;;  %p107_p0 = scmp.ne.s32.totalorder %s1001_s14, %s997_s13 }
   0x6   : > { %p95_p1 = scmp.eq.s32.totalorder %s94_s20, 0  ;;  %p108_p2 = scmp.eq.s32.totalorder %s1048_s16, 1 }
   0x7   : > { %p113_p3 = scmp.ne.s32.totalorder %s997_s13, %s993_s12  ;;  %p114_p4 = scmp.eq.s32.totalorder %s776_s17, 1 }
   0x8   : > { %s1063_s21 = scalar_select %p95_p1, %s1001_s14, %s97_s19  }
   0x9   : > { %p1065_p5 = por %p108_p2, %p107_p0  ;;  %p1069_p6 = por %p114_p4, %p113_p3 }
   0xa   : > { %p779_p7 = scmp.ge.s32.totalorder %s1005_s15, 1  ;;  %p144_p8 = scmp.lt.s32.totalorder %s1005_s15, 3 }
   0xc   : > { %p145_p9 = pnand %p779_p7, %p144_p8 }
   0xd   : > { %s781_s26 = sshll.u32 (!%p145_p9), %s1048_s16, 5  ;;  %s170_s17 = sand.u32 (!%p145_p9), 1, %s997_s13  }
   0xe   : > { %148 = sbr.rel (%p145_p9) target bundleno = 287 (0x11f), region = 28  ;;  %p174_p10 = scmp.lt.s32.totalorder (!%p145_p9), %s781_s26, 63 }
   0xf   : > { %s780_s19 = sshll.u32 (!%p145_p9), %s170_s17, 1  ;;  %s874_s20 = sshll.u32 (!%p145_p9), %s1048_s16, 1 }
  0x10   : > { %s172_s27 = scalar_lea.vmem (!%p145_p9), [#allocation2], %s780_s19  ;;  %s673_s16 = scalar_lea.sflag (!%p145_p9), [#allocation3], %s170_s17 }
  0x11   : > { %s689_s28 = sshll.u32 (!%p145_p9), %s172_s27, 4  ;;  %s690_s28 = int_to_ptr.vmem [resolvable:$true] %s689_s28 }
  0x13   : > { %v222_v0 = vld [vmem:[%s1430_s1 + $0x10] sm:$0x3]  ;;  %vm367_vm0 = vcmask 1041408   ;;  %s1440_s26 = smov (!%p174_p10, %s781_s26), 63  ;;  %v894_v4 = vld [vmem:[%s1430_s1 + $0x8] sm:$0xff]  ;;  %v893_v5 = vld [vmem:[%s1430_s1] sm:$0xff] }
  0x14   : > { %v312_v1 = vunpack.c.l.b16 %v222_v0  ;;  %s782_s29 = sshll.u32 %s1440_s26, 2  ;;  %vm318_vm1 = vcmask 293888   ;;  %s784_s8 = sshll.u32 %s1440_s26, 3  ;;  %vm460_vm2 = vcmask 64512   ;;  %vm631_vm3 = vcmask 1040384  }
  0x15   : > { %s1091_s7 = scalar_lea.vmem %s1429_s0, %s782_s29  ;;  %s1129_s11 = scalar_lea.vmem %s1431_s2, %s784_s8  ;;  %vm633_vm4 = vcmask 58368  }
  0x16   : > { %v315_v2 = vpack.c.b16 %v312_v1, %v312_v1  ;;  %v877_v6 = vld [vmem:[%s1091_s7] sm:$0xff]  ;;  %v878_v10 = vld [vmem:[%s1091_s7 + $0x8] sm:$0xff]  ;;  %v879_v14 = vld [vmem:[%s1091_s7 + $0x10] sm:$0xff]  ;;  %s687_s26 = scalar_lea.hbm %s1432_s3, %s874_s20 }
  0x17   : > { %v881_v7 = vld [vmem:[%s1091_s7 + $0x20] sm:$0xff]  ;;  %v882_v11 = vld [vmem:[%s1091_s7 + $0x28] sm:$0xff]  ;;  %v883_v15 = vld [vmem:[%s1091_s7 + $0x30] sm:$0xff]  ;;  %s691_s29 = sshll.u32 %s687_s26, 4  ;;  %s692_s29 = int_to_ptr.hbm [resolvable:$true] %s691_s29 }
  0x18   : > { %v369_v3 = vsel %vm367_vm0, %v315_v2, 0  ;;  %v885_v8 = vld [vmem:[%s1091_s7 + $0x40] sm:$0xff]  ;;  %v886_v12 = vld [vmem:[%s1091_s7 + $0x48] sm:$0xff]  ;;  %v887_v16 = vld [vmem:[%s1091_s7 + $0x50] sm:$0xff]  ;;  %s957_s30 = sshra.s32 %s692_s29, 4  ;;  %s958_s30 = int_to_ptr.hbm [resolvable:$true] %s957_s30 }
  0x19   : > { %376 = vmatpush.bf16.msra.mxu0 %v369_v3  ;;  %895 = vmatpush.bf16.msra.mxu1 %v369_v3  ;;  %v889_v9 = vld [vmem:[%s1091_s7 + $0x60] sm:$0xff]  ;;  %v890_v13 = vld [vmem:[%s1091_s7 + $0x68] sm:$0xff]  ;;  %v891_v17 = vld [vmem:[%s1091_s7 + $0x70] sm:$0xff]  ;;  %s959_s4 = scalar_lea.hbm %s958_s30, 2  ;;  %p964_p0 = scmp.lt.s32.totalorder %s958_s30, %s1432_s3 }
  0x1a   : > { %896 = vmatpush.bf16.msra.mxu2 %v369_v3  ;;  %897 = vmatpush.bf16.msra.mxu3 %v369_v3  ;;  %v880_v18 = vld [vmem:[%s1091_s7 + $0x18] sm:$0xff]  ;;  %p960_p11 = scmp.ne.s32.totalorder %s958_s30, %s959_s4 }
  0x1b   : > { %v884_v19 = vld [vmem:[%s1091_s7 + $0x38] sm:$0xff] }
  0x1c   : > { %v888_v20 = vld [vmem:[%s1091_s7 + $0x58] sm:$0xff]  ;;  %p961_p12 = pnand %p960_p11, %p1065_p5 }
  0x1d   : > { %377 = vmatpush.bf16.msra.mxu0 %v894_v4  ;;  %898 = vmatpush.bf16.msra.mxu1 %v894_v4  ;;  %v892_v21 = vld [vmem:[%s1091_s7 + $0x78] sm:$0xff]  ;;  %s963_s7 = scalar_lea.hbm %s1432_s3, 4 }
  0x1e   : > { %899 = vmatpush.bf16.msra.mxu2 %v894_v4  ;;  %900 = vmatpush.bf16.msra.mxu3 %v894_v4  ;;  %p962_p13 = pneg %p961_p12  ;;  %p965_p1 = scmp.lt.s32.totalorder %s963_s7, %s959_s4 }
  0x20   : > { %p966_p2 = por %p965_p1, %p964_p0 }
  0x21   : > { %378 = vmatpush.bf16.msra.mxu0 %v893_v5  ;;  %901 = vmatpush.bf16.msra.mxu1 %v893_v5 }
  0x22   : > { %902 = vmatpush.bf16.msra.mxu2 %v893_v5  ;;  %903 = vmatpush.bf16.msra.mxu3 %v893_v5  ;;  %p967_p3 = pnand %p966_p2, %p962_p13 }
  0x24   : > { %857 = vmatmul.msk.bf16.vlgmr.msra.gmra.mxu0 %vm318_vm1, %v877_v6  ;;  %861 = vmatmul.msk.bf16.vlgmr.msra.gmra.mxu1 %vm318_vm1, %v881_v7 }
  0x25   : > { %865 = vmatmul.msk.bf16.vlgmr.msra.gmra.mxu2 %vm318_vm1, %v885_v8  ;;  %869 = vmatmul.msk.bf16.vlgmr.msra.gmra.mxu3 %vm318_vm1, %v889_v9 }
  0x34   : > { %858 = vmatmul.msk.bf16.gmra.mxu0 %vm318_vm1, %v878_v10  ;;  %862 = vmatmul.msk.bf16.gmra.mxu1 %vm318_vm1, %v882_v11 }
  0x35   : > { %866 = vmatmul.msk.bf16.gmra.mxu2 %vm318_vm1, %v886_v12  ;;  %870 = vmatmul.msk.bf16.gmra.mxu3 %vm318_vm1, %v890_v13 }
  0x44   : > { %859 = vmatmul.msk.bf16.gmra.mxu0 %vm318_vm1, %v879_v14  ;;  %863 = vmatmul.msk.bf16.gmra.mxu1 %vm318_vm1, %v883_v15 }
  0x45   : > { %867 = vmatmul.msk.bf16.gmra.mxu2 %vm318_vm1, %v887_v16  ;;  %871 = vmatmul.msk.bf16.gmra.mxu3 %vm318_vm1, %v891_v17 }
  0x54   : > { %860 = vmatmul.msk.bf16.gmra.mxu0 %vm318_vm1, %v880_v18  ;;  %864 = vmatmul.msk.bf16.gmra.mxu1 %vm318_vm1, %v884_v19 }
  0x55   : > { %868 = vmatmul.msk.bf16.gmra.mxu2 %vm318_vm1, %v888_v20  ;;  %872 = vmatmul.msk.bf16.gmra.mxu3 %vm318_vm1, %v892_v21 }
  0xa1   : > { %v380_v22 = vpop.f32.mrf.mxu0  ;;  %v1131_v23 = vpop.f32.mrf.mxu1 }
  0xa2   : > { %635 = vst.msk [vmem:[%s1129_s11] sm:$0xff] %vm460_vm2, %v380_v22  ;;  %v530_v45 = vmul.f32 %v380_v22, %v380_v22  ;;  %v461_v48 = vsel %vm460_vm2, %v380_v22, 0.0  ;;  %v538_v19 = vmul.f32 %v1131_v23, %v1131_v23 }
  0xa3   : > { %643 = vst.msk [vmem:[%s1129_s11 + $0x40] sm:$0xff] %vm460_vm2, %v1131_v23 }
  0xa4   : > { %v562_v53 = vsel %vm460_vm2, %v530_v45, 0.0 }
  0xa8   : > { %v1138_v24 = vpop.f32.mrf.mxu2  ;;  %v1147_v27 = vpop.f32.mrf.mxu3 }
  0xa9   : > { %v382_v25 = vpop.f32.mrf.mxu0  ;;  %v1140_v26 = vpop.f32.mrf.mxu1  ;;  %651 = vst.msk [vmem:[%s1129_s11 + $0x80] sm:$0xff] %vm460_vm2, %v1138_v24 }
  0xaa   : > { %636 = vst.msk [vmem:[%s1129_s11 + $0x8] sm:$0xff] %vm460_vm2, %v382_v25  ;;  %v531_v43 = vmul.f32 %v382_v25, %v382_v25  ;;  %v462_v46 = vsel %vm460_vm2, %v382_v25, 0.0 }
  0xab   : > { %644 = vst.msk [vmem:[%s1129_s11 + $0x48] sm:$0xff] %vm460_vm2, %v1140_v26  ;;  %v463_v52 = vadd.f32 %v462_v46, %v461_v48  ;;  %v577_v46 = vsel %vm460_vm2, %v538_v19, 0.0 }
  0xac   : > { %659 = vst.msk [vmem:[%s1129_s11 + $0xc0] sm:$0xff] %vm460_vm2, %v1147_v27  ;;  %v563_v49 = vsel %vm460_vm2, %v531_v43, 0.0 }
  0xad   : > { %v564_v58 = vadd.f32 %v563_v49, %v562_v53 }
  0xb0   : > { %v1155_v28 = vpop.f32.mrf.mxu2  ;;  %v1164_v31 = vpop.f32.mrf.mxu3 }
  0xb1   : > { %v385_v29 = vpop.f32.mrf.mxu0  ;;  %v1157_v30 = vpop.f32.mrf.mxu1  ;;  %652 = vst.msk [vmem:[%s1129_s11 + $0x88] sm:$0xff] %vm460_vm2, %v1155_v28  ;;  %v547_v19 = vmul.f32 %v1155_v28, %v1155_v28 }
  0xb2   : > { %637 = vst.msk [vmem:[%s1129_s11 + $0x10] sm:$0xff] %vm460_vm2, %v385_v29  ;;  %v532_v47 = vmul.f32 %v385_v29, %v385_v29  ;;  %v464_v50 = vsel %vm460_vm2, %v385_v29, 0.0  ;;  %v540_v48 = vmul.f32 %v1157_v30, %v1157_v30 }
  0xb3   : > { %645 = vst.msk [vmem:[%s1129_s11 + $0x50] sm:$0xff] %vm460_vm2, %v1157_v30  ;;  %v465_v59 = vadd.f32 %v464_v50, %v463_v52 }
  0xb4   : > { %660 = vst.msk [vmem:[%s1129_s11 + $0xc8] sm:$0xff] %vm460_vm2, %v1164_v31  ;;  %v565_v54 = vsel %vm460_vm2, %v532_v47, 0.0  ;;  %v478_v47 = vsel %vm460_vm2, %v1140_v26, 0.0 }
  0xb5   : > { %v566_v2 = vadd.f32 %v565_v54, %v564_v58 }
  0xb8   : > { %v1172_v32 = vpop.f32.mrf.mxu2  ;;  %v1181_v35 = vpop.f32.mrf.mxu3 }
  0xb9   : > { %v387_v33 = vpop.f32.mrf.mxu0  ;;  %v1174_v34 = vpop.f32.mrf.mxu1  ;;  %653 = vst.msk [vmem:[%s1129_s11 + $0x90] sm:$0xff] %vm460_vm2, %v1172_v32 }
  0xba   : > { %638 = vst.msk [vmem:[%s1129_s11 + $0x18] sm:$0xff] %vm460_vm2, %v387_v33  ;;  %v533_v51 = vmul.f32 %v387_v33, %v387_v33  ;;  %v466_v55 = vsel %vm460_vm2, %v387_v33, 0.0  ;;  %v476_v33 = vsel %vm460_vm2, %v1131_v23, 0.0  ;;  %v541_v52 = vmul.f32 %v1174_v34, %v1174_v34 }
  0xbb   : > { %646 = vst.msk [vmem:[%s1129_s11 + $0x58] sm:$0xff] %vm460_vm2, %v1174_v34  ;;  %v467_v3 = vadd.f32 %v466_v55, %v465_v59 }
  0xbc   : > { %661 = vst.msk [vmem:[%s1129_s11 + $0xd0] sm:$0xff] %vm460_vm2, %v1181_v35  ;;  %v567_v62 = vsel %vm460_vm2, %v533_v51, 0.0  ;;  %v480_v51 = vsel %vm460_vm2, %v1157_v30, 0.0 }
  0xbd   : > { %v568_v7 = vadd.f32 %v567_v62, %v566_v2  ;;  %v583_v62 = vsel %vm460_vm2, %v541_v52, 0.0 }
  0xc0   : > { %v1189_v36 = vpop.f32.mrf.mxu2  ;;  %v1198_v39 = vpop.f32.mrf.mxu3 }
  0xc1   : > { %v390_v37 = vpop.f32.mrf.mxu0  ;;  %v1191_v38 = vpop.f32.mrf.mxu1  ;;  %654 = vst.msk [vmem:[%s1129_s11 + $0x98] sm:$0xff] %vm460_vm2, %v1189_v36 }
  0xc2   : > { %639 = vst.msk [vmem:[%s1129_s11 + $0x20] sm:$0xff] %vm460_vm2, %v390_v37  ;;  %v534_v56 = vmul.f32 %v390_v37, %v390_v37  ;;  %v468_v63 = vsel %vm460_vm2, %v390_v37, 0.0  ;;  %v539_v37 = vmul.f32 %v1140_v26, %v1140_v26  ;;  %v581_v26 = vsel %vm460_vm2, %v540_v48, 0.0 }
  0xc3   : > { %647 = vst.msk [vmem:[%s1129_s11 + $0x60] sm:$0xff] %vm460_vm2, %v1191_v38  ;;  %v469_v8 = vadd.f32 %v468_v63, %v467_v3  ;;  %v542_v58 = vmul.f32 %v1191_v38, %v1191_v38  ;;  %v484_v63 = vsel %vm460_vm2, %v1191_v38, 0.0 }
  0xc4   : > { %662 = vst.msk [vmem:[%s1129_s11 + $0xd8] sm:$0xff] %vm460_vm2, %v1198_v39  ;;  %v569_v4 = vsel %vm460_vm2, %v534_v56, 0.0  ;;  %v579_v50 = vsel %vm460_vm2, %v539_v37, 0.0  ;;  %v482_v56 = vsel %vm460_vm2, %v1174_v34, 0.0 }
  0xc5   : > { %v570_v11 = vadd.f32 %v569_v4, %v568_v7  ;;  %v585_v3 = vsel %vm460_vm2, %v542_v58, 0.0 }
  0xc8   : > { %v1206_v40 = vpop.f32.mrf.mxu2  ;;  %v1215_v44 = vpop.f32.mrf.mxu3 }
  0xc9   : > { %v392_v41 = vpop.f32.mrf.mxu0  ;;  %v1208_v42 = vpop.f32.mrf.mxu1  ;;  %655 = vst.msk [vmem:[%s1129_s11 + $0xa0] sm:$0xff] %vm460_vm2, %v1206_v40  ;;  %v550_v48 = vmul.f32 %v1206_v40, %v1206_v40 }
  0xca   : > { %640 = vst.msk [vmem:[%s1129_s11 + $0x28] sm:$0xff] %vm460_vm2, %v392_v41  ;;  %v535_v0 = vmul.f32 %v392_v41, %v392_v41  ;;  %v470_v5 = vsel %vm460_vm2, %v392_v41, 0.0  ;;  %v486_v4 = vsel %vm460_vm2, %v1208_v42, 0.0 }
  0xcb   : > { %648 = vst.msk [vmem:[%s1129_s11 + $0x68] sm:$0xff] %vm460_vm2, %v1208_v42  ;;  %v471_v12 = vadd.f32 %v470_v5, %v469_v8 }
  0xcc   : > { %663 = vst.msk [vmem:[%s1129_s11 + $0xe0] sm:$0xff] %vm460_vm2, %v1215_v44  ;;  %v571_v9 = vsel %vm460_vm2, %v535_v0, 0.0  ;;  %v543_v0 = vmul.f32 %v1208_v42, %v1208_v42 }
  0xcd   : > { %v572_v15 = vadd.f32 %v571_v9, %v570_v11 }
  0xce   : > { %v587_v8 = vsel %vm460_vm2, %v543_v0, 0.0  ;;  %v554_v0 = vmul.f32 %v1147_v27, %v1147_v27 }
  0xd0   : > { %v1230_v57 = vpop.f32.mrf.mxu2  ;;  %v1241_v1 = vpop.f32.mrf.mxu3 }
  0xd1   : > { %v395_v60 = vpop.f32.mrf.mxu0  ;;  %v1232_v61 = vpop.f32.mrf.mxu1  ;;  %656 = vst.msk [vmem:[%s1129_s11 + $0xa8] sm:$0xff] %vm460_vm2, %v1230_v57 }
  0xd2   : > { %641 = vst.msk [vmem:[%s1129_s11 + $0x30] sm:$0xff] %vm460_vm2, %v395_v60  ;;  %v536_v6 = vmul.f32 %v395_v60, %v395_v60  ;;  %v472_v10 = vsel %vm460_vm2, %v395_v60, 0.0  ;;  %v544_v5 = vmul.f32 %v1232_v61, %v1232_v61  ;;  %v488_v38 = vsel %vm460_vm2, %v1232_v61, 0.0 }
  0xd3   : > { %649 = vst.msk [vmem:[%s1129_s11 + $0x70] sm:$0xff] %vm460_vm2, %v1232_v61  ;;  %v473_v16 = vadd.f32 %v472_v10, %v471_v12  ;;  %v546_v12 = vmul.f32 %v1138_v24, %v1138_v24 }
  0xd4   : > { %664 = vst.msk [vmem:[%s1129_s11 + $0xe8] sm:$0xff] %vm460_vm2, %v1241_v1  ;;  %v573_v13 = vsel %vm460_vm2, %v536_v6, 0.0 }
  0xd5   : > { %v574_v25 = vadd.f32 %v573_v13, %v572_v15  ;;  %v589_v13 = vsel %vm460_vm2, %v544_v5, 0.0 }
  0xd8   : > { %v1254_v14 = vpop.f32.mrf.mxu2  ;;  %v1264_v22 = vpop.f32.mrf.mxu3 }
  0xd9   : > { %v397_v17 = vpop.f32.mrf.mxu0  ;;  %v417_v18 = vpop.f32.mrf.mxu1  ;;  %657 = vst.msk [vmem:[%s1129_s11 + $0xb0] sm:$0xff] %vm460_vm2, %v1254_v14 }
  0xda   : > { %v474_v20 = vsel %vm460_vm2, %v397_v17, 0.0  ;;  %v537_v21 = vmul.f32 %v397_v17, %v397_v17  ;;  %642 = vst.msk [vmem:[%s1129_s11 + $0x38] sm:$0xff] %vm460_vm2, %v397_v17  ;;  %v545_v9 = vmul.f32 %v417_v18, %v417_v18  ;;  %v490_v42 = vsel %vm460_vm2, %v417_v18, 0.0 }
  0xdb   : > { %v475_v29 = vadd.f32 %v474_v20, %v473_v16  ;;  %650 = vst.msk [vmem:[%s1129_s11 + $0x78] sm:$0xff] %vm460_vm2, %v417_v18  ;;  %v492_v17 = vsel %vm460_vm2, %v1138_v24, 0.0  ;;  %v548_v18 = vmul.f32 %v1172_v32, %v1172_v32  ;;  %v496_v24 = vsel %vm460_vm2, %v1172_v32, 0.0 }
  0xdc   : > { %v575_v41 = vsel %vm460_vm2, %v537_v21, 0.0  ;;  %665 = vst.msk [vmem:[%s1129_s11 + $0xf0] sm:$0xff] %vm460_vm2, %v1264_v22  ;;  %v591_v61 = vsel %vm460_vm2, %v545_v9, 0.0  ;;  %v500_v32 = vsel %vm460_vm2, %v1206_v40, 0.0  ;;  %v504_v40 = vsel %vm460_vm2, %v1254_v14, 0.0 }
  0xdd   : > { %v477_v43 = vadd.f32 %v476_v33, %v475_v29  ;;  %v576_v45 = vadd.f32 %v575_v41, %v574_v25  ;;  %v593_v25 = vsel %vm460_vm2, %v546_v12, 0.0  ;;  %v494_v29 = vsel %vm460_vm2, %v1155_v28, 0.0 }
  0xde   : > { %v595_v41 = vsel %vm460_vm2, %v547_v19, 0.0  ;;  %v498_v28 = vsel %vm460_vm2, %v1189_v36, 0.0  ;;  %v557_v12 = vmul.f32 %v1198_v39, %v1198_v39 }
  0xdf   : > { %v479_v23 = vadd.f32 %v478_v47, %v477_v43  ;;  %v578_v49 = vadd.f32 %v577_v46, %v576_v45  ;;  %v549_v43 = vmul.f32 %v1189_v36, %v1189_v36  ;;  %v597_v47 = vsel %vm460_vm2, %v548_v18, 0.0 }
  0xe0   : > { %v1286_v53 = vpop.f32.mrf.mxu2  ;;  %v1296_v59 = vpop.f32.mrf.mxu3  ;;  %v502_v36 = vsel %vm460_vm2, %v1230_v57, 0.0  ;;  %v560_v18 = vmul.f32 %v1264_v22, %v1264_v22 }
  0xe1   : > { %v481_v54 = vadd.f32 %v480_v51, %v479_v23  ;;  %v580_v55 = vadd.f32 %v579_v50, %v578_v49  ;;  %658 = vst.msk [vmem:[%s1129_s11 + $0xb8] sm:$0xff] %vm460_vm2, %v1286_v53  ;;  %v599_v50 = vsel %vm460_vm2, %v549_v43, 0.0  ;;  %v551_v51 = vmul.f32 %v1230_v57, %v1230_v57 }
  0xe2   : > { %666 = vst.msk [vmem:[%s1129_s11 + $0xf8] sm:$0xff] %vm460_vm2, %v1296_v59 }
  0xe3   : > { %v582_v30 = vadd.f32 %v581_v26, %v580_v55  ;;  %v483_v60 = vadd.f32 %v482_v56, %v481_v54  ;;  %v601_v55 = vsel %vm460_vm2, %v550_v48, 0.0  ;;  %v552_v26 = vmul.f32 %v1254_v14, %v1254_v14 }
  0xe4   : > { %v555_v14 = vmul.f32 %v1164_v31, %v1164_v31 }
  0xe5   : > { %v485_v2 = vadd.f32 %v484_v63, %v483_v60  ;;  %v584_v34 = vadd.f32 %v583_v62, %v582_v30  ;;  %v603_v30 = vsel %vm460_vm2, %v551_v51, 0.0  ;;  %v553_v60 = vmul.f32 %v1286_v53, %v1286_v53 }
  0xe6   : > { %v605_v57 = vsel %vm460_vm2, %v552_v26, 0.0 }
  0xe7   : > { %v487_v6 = vadd.f32 %v486_v4, %v485_v2  ;;  %v586_v7 = vadd.f32 %v585_v3, %v584_v34  ;;  %v506_v2 = vsel %vm460_vm2, %v1286_v53, 0.0  ;;  %v508_v4 = vsel %vm460_vm2, %v1147_v27, 0.0 }
  0xe8   : > { %v607_v5 = vsel %vm460_vm2, %v553_v60, 0.0  ;;  %v556_v53 = vmul.f32 %v1181_v35, %v1181_v35  ;;  %v512_v27 = vsel %vm460_vm2, %v1181_v35, 0.0  ;;  %v516_v35 = vsel %vm460_vm2, %v1215_v44, 0.0 }
  0xe9   : > { %v489_v10 = vadd.f32 %v488_v38, %v487_v6  ;;  %v588_v11 = vadd.f32 %v587_v8, %v586_v7  ;;  %v609_v8 = vsel %vm460_vm2, %v554_v0, 0.0  ;;  %v510_v38 = vsel %vm460_vm2, %v1164_v31, 0.0 }
  0xea   : > { %v514_v31 = vsel %vm460_vm2, %v1198_v39, 0.0  ;;  %v518_v39 = vsel %vm460_vm2, %v1241_v1, 0.0 }
  0xeb   : > { %v590_v15 = vadd.f32 %v589_v13, %v588_v11  ;;  %v491_v16 = vadd.f32 %v490_v42, %v489_v10  ;;  %v611_v11 = vsel %vm460_vm2, %v555_v14, 0.0 }
  0xed   : > { %v493_v20 = vadd.f32 %v492_v17, %v491_v16  ;;  %v592_v21 = vadd.f32 %v591_v61, %v590_v15  ;;  %v613_v15 = vsel %vm460_vm2, %v556_v53, 0.0  ;;  %v558_v16 = vmul.f32 %v1215_v44, %v1215_v44 }
  0xee   : > { %v615_v61 = vsel %vm460_vm2, %v557_v12, 0.0  ;;  %v520_v44 = vsel %vm460_vm2, %v1264_v22, 0.0 }
  0xef   : > { %v495_v33 = vadd.f32 %v494_v29, %v493_v20  ;;  %v594_v37 = vadd.f32 %v593_v25, %v592_v21  ;;  %v559_v20 = vmul.f32 %v1241_v1, %v1241_v1  ;;  %v617_v29 = vsel %vm460_vm2, %v558_v16, 0.0 }
  0xf0   : > { %v522_v1 = vsel %vm460_vm2, %v1296_v59, 0.0 }
  0xf1   : > { %v497_v45 = vadd.f32 %v496_v24, %v495_v33  ;;  %v596_v46 = vadd.f32 %v595_v41, %v594_v37  ;;  %v619_v41 = vsel %vm460_vm2, %v559_v20, 0.0  ;;  %v561_v24 = vmul.f32 %v1296_v59, %v1296_v59 }
  0xf3   : > { %v598_v23 = vadd.f32 %v597_v47, %v596_v46  ;;  %v499_v49 = vadd.f32 %v498_v28, %v497_v45  ;;  %v621_v46 = vsel %vm460_vm2, %v560_v18, 0.0  ;;  %v623_v48 = vsel %vm460_vm2, %v561_v24, 0.0 }
  0xf5   : > { %v501_v52 = vadd.f32 %v500_v32, %v499_v49  ;;  %v600_v54 = vadd.f32 %v599_v50, %v598_v23 }
  0xf7   : > { %v503_v56 = vadd.f32 %v502_v36, %v501_v52  ;;  %v602_v58 = vadd.f32 %v601_v55, %v600_v54 }
  0xf9   : > { %v604_v62 = vadd.f32 %v603_v30, %v602_v58  ;;  %v505_v63 = vadd.f32 %v504_v40, %v503_v56 }
  0xfb   : > { %v606_v34 = vadd.f32 %v605_v57, %v604_v62  ;;  %v507_v3 = vadd.f32 %v506_v2, %v505_v63 }
  0xfd   : > { %v509_v6 = vadd.f32 %v508_v4, %v507_v3  ;;  %v608_v7 = vadd.f32 %v607_v5, %v606_v34 }
  0xff   : > { %v511_v9 = vadd.f32 %v510_v38, %v509_v6  ;;  %v610_v10 = vadd.f32 %v609_v8, %v608_v7 }
 0x101   : > { %v513_v13 = vadd.f32 %v512_v27, %v511_v9  ;;  %v612_v42 = vadd.f32 %v611_v11, %v610_v10 }
 0x103   : > { %v614_v17 = vadd.f32 %v613_v15, %v612_v42  ;;  %v515_v19 = vadd.f32 %v514_v31, %v513_v13 }
 0x105   : > { %v517_v21 = vadd.f32 %v516_v35, %v515_v19  ;;  %v616_v25 = vadd.f32 %v615_v61, %v614_v17 }
 0x107   : > { %v519_v33 = vadd.f32 %v518_v39, %v517_v21  ;;  %v618_v37 = vadd.f32 %v617_v29, %v616_v25 }
 0x109   : > { %v620_v43 = vadd.f32 %v619_v41, %v618_v37  ;;  %v521_v45 = vadd.f32 %v520_v44, %v519_v33 }
 0x10b   : > { %v622_v47 = vadd.f32 %v621_v46, %v620_v43  ;;  %v523_v28 = vadd.f32 %v522_v1, %v521_v45 }
 0x10d   : > { %v524_v23 = vrot.slane %v523_v28, 4  ;;  %v624_v49 = vadd.f32 %v623_v48, %v622_v47 }
 0x10f   : > { %v525_v50 = vadd.f32 %v524_v23, %v523_v28  ;;  %v625_v22 = vrot.slane %v624_v49, 4 }
 0x111   : > { %v526_v32 = vrot.slane %v525_v50, 2  ;;  %v626_v51 = vadd.f32 %v625_v22, %v624_v49 }
 0x113   : > { %v527_v52 = vadd.f32 %v526_v32, %v525_v50  ;;  %v627_v54 = vrot.slane %v626_v51, 2 }
 0x115   : > { %v528_v59 = vrot.slane %v527_v52, 1  ;;  %v628_v55 = vadd.f32 %v627_v54, %v626_v51 }
 0x117   : > { %v629_v36 = vrot.slane %v628_v55, 1  ;;  %v529_v26 = vadd.f32 %v528_v59, %v527_v52 }
 0x119   : > { %v630_v56 = vadd.f32 %v629_v36, %v628_v55 }
 0x11b   : > { %v632_v58 = vsel %vm631_vm3, %v529_v26, %v630_v56 }
 0x11c   : > { %634 = vst.msk [vmem:[%s172_s27] sm:$0x3] %vm633_vm4, %v632_v58 }
 0x11d   : > { %970 = shalt.err (!%p967_p3)
}
 0x11e   : > { %904 = dma.vmem_to_hbm [thread:$0]  (%p1065_p5), %s690_s28, 32, %s692_s29, %s673_s16  }
 0x11f PF: > { %p910_p4 = scmp.ge.s32.totalorder %s1005_s15, 2  ;;  %s711_s10 = sand.u32 1, %s993_s12  }
 0x120   : > { %s712_s11 = scalar_lea.sflag [#allocation3], %s711_s10 }
 0x121   : > { %p907_p7 = pnand %p910_p4, %p1069_p6 }
 0x123   : > { %p908_p8 = pneg %p907_p7 }
 0x125   : > { %988 = dma.done.wait (%p908_p8), %s712_s11, 32  }
 0x126   : > { %990 = vsyncadd (%p908_p8), %s712_s11, 4294967264  ;;  %p14_p9 = scmp.ge.s32.totalorder %s1052_s18, 4   ;;  %s1435_s12 = smov %s997_s13 }
 0x127   : > { %s1436_s13 = smov %s1001_s14  ;;  %s1437_s14 = smov %s1063_s21 }
 0x128   : > { %s1438_s15 = smov %s1052_s18  ;;  %16 = sbr.rel (!%p14_p9) target bundleno = 3 (0x3), region = 75 }
 0x12d   :  { %718 = vsyncpa [#allocation3], 1 }
 0x12e   :  { %720 = vsyncpa [#allocation3 + $0x1], 1 }

</bundles_post_ra>
